<compile_context>
chip_gen: v6e
topology: v6e:2x2x1
jax: 0.10.0
libtpu: 0.0.40
codegen_flags: <defaults>
</compile_context>

<pallas_src>
import functools

import jax
import jax.numpy as jnp
from jax.experimental import pallas as pl
from jax.experimental.pallas import tpu as pltpu


def _conv_operator(w, h_in, w_in):
    """Dense operator matrix of a 1-channel 'valid' cross-correlation.

    Returns C with shape (h_in*w_in, h_out*w_out) such that
        x.reshape(-1, h_in*w_in) @ C == conv2d(x, w).reshape(-1, h_out*w_out)
    (PyTorch Conv2d semantics, no bias).  C(w).T is exactly the operator of
    ConvTranspose2d with kernel w (stride 1, no padding, no bias).
    """
    k = w.shape[0]
    h_out, w_out = h_in - k + 1, w_in - k + 1
    ki, kj, i, j = jnp.meshgrid(jnp.arange(k), jnp.arange(k),
                                jnp.arange(h_out), jnp.arange(w_out),
                                indexing="ij")
    rows = (i + ki) * w_in + (j + kj)
    cols = i * w_out + j
    vals = w[ki, kj]
    c = jnp.zeros((h_in * w_in, h_out * w_out), jnp.float32)
    return c.at[rows.ravel(), cols.ravel()].add(vals.ravel())


def prepare_params(params, h_in, w_in):
    """One-time parameter prep (run per weight update, NOT per forward call)."""
    hidden = params["w_hh"].shape[0]
    cmat = _conv_operator(params["w_conv"], h_in, w_in)          # (P_in, P_out)
    dmat = _conv_operator(params["w_deconv"], h_in, w_in).T      # (P_out, P_in)
    return dict(
        cw=cmat @ params["w_ih"],                                # (P_in, hidden)
        b=(params["b_ih"] + params["b_hh"]).reshape(1, hidden),  # folded biases
        w_hh=params["w_hh"],                                     # (hidden, hidden)
        w_out=params["w_out"],                                   # (hidden, P_out)
        dmat=dmat,                                               # (P_out, P_in)
    )


def _convrnn_kernel(seq_len, x_ref, h0_ref, cw_ref, b_ref, w_hh_ref,
                    w_out_ref, dmat_ref, out_ref, hT_ref):
    rows, _ = x_ref.shape                      # rows = nb * seq_len (batch-major)
    nb = rows // seq_len
    hidden = w_hh_ref.shape[0]

    # ---- Stage A: conv + input projection fused into one 2-D MXU matmul ----
    pre = (jnp.dot(x_ref[...], cw_ref[...], preferred_element_type=jnp.float32)
           + b_ref[...]).reshape(nb, seq_len, hidden)

    # ---- Stage B: serial recurrence (latency-bound dependent chain only) ----
    w_hh = w_hh_ref[...]
    ht = h0_ref[...].reshape(nb, hidden)
    hs = []
    for t in range(seq_len):
        ht = jnp.tanh(pre[:, t, :]
                      + jnp.dot(ht, w_hh, preferred_element_type=jnp.float32))
        hs.append(ht)
    hT_ref[...] = ht.reshape(hT_ref.shape)

    # ---- Stage C: batched epilogue (Linear + sigmoid + deconv, one store) ----
    z = jnp.stack(hs, axis=1).reshape(rows, hidden)
    logits = jnp.dot(z, w_out_ref[...], preferred_element_type=jnp.float32)
    s = 0.5 * (jnp.tanh(0.5 * logits) + 1.0)              # exact sigmoid (tanh form)
    out_ref[...] = jnp.dot(s, dmat_ref[...], preferred_element_type=jnp.float32)


@functools.partial(jax.jit, static_argnames=("multicore",))
def conv_rnn_forward(x, h0, prep, multicore=False):
    """x: (N, 1, T, H_in, W_in) in [0,1]; h0: (1, N, hidden); prep from prepare_params.

    Returns (out (N,1,T,H_in,W_in), h (1,N,hidden)), matching ConvRNN.forward.
    """
    n, ch, t, h_in, w_in = x.shape
    assert ch == 1
    p_in = h_in * w_in
    hidden = prep["w_hh"].shape[0]

    x_flat = x.reshape(n * t, p_in)            # batch-major rows; pure reshape
    h0_r = h0[0][:, None, :]                   # (N, 1, hidden)

    kernel = functools.partial(_convrnn_kernel, t)
    out_shape = (jax.ShapeDtypeStruct((n * t, p_in), jnp.float32),
                 jax.ShapeDtypeStruct((n, 1, hidden), jnp.float32))
    operands = (x_flat, h0_r, prep["cw"], prep["b"], prep["w_hh"],
                prep["w_out"], prep["dmat"])
    vmem = pl.BlockSpec(memory_space=pltpu.MemorySpace.VMEM)

    if multicore and n > 1:
        # v7x: shard independent per-batch recurrences across the 2 TensorCores.
        grid_spec = pltpu.PrefetchScalarGridSpec(
            num_scalar_prefetch=0, grid=(n,),
            in_specs=[
                pl.BlockSpec((t, p_in), lambda i: (i, 0)),        # x rows of batch i
                pl.BlockSpec((1, 1, hidden), lambda i: (i, 0, 0)),  # h0 of batch i
                vmem,   # cw   (whole array resident in VMEM)
                vmem,   # b
                vmem,   # w_hh
                vmem,   # w_out
                vmem,   # dmat
            ],
            out_specs=(pl.BlockSpec((t, p_in), lambda i: (i, 0)),
                       pl.BlockSpec((1, 1, hidden), lambda i: (i, 0, 0))),
        )
        out_flat, hT = pl.pallas_call(
            kernel, out_shape=out_shape, grid_spec=grid_spec,
            compiler_params=pltpu.CompilerParams(
                dimension_semantics=("parallel",)),
        )(*operands)
    else:
        # v5e / v6e (single TensorCore): one invocation, whole problem in VMEM.
        out_flat, hT = pl.pallas_call(
            kernel, out_shape=out_shape,
            in_specs=[vmem] * 7, out_specs=(vmem, vmem),
        )(*operands)

    out = out_flat.reshape(n, 1, t, h_in, w_in)
    return out, hT[:, 0, :][None]


def _use_multicore(batch):
    try:
        kind = jax.devices()[0].device_kind.lower()
    except Exception:
        return False
    return batch > 1 and ("v7" in kind)


def init_params(key, k, hidden_dim, h_in, w_in):
    """PyTorch-like uniform init; Linear/RNN weights stored as (in, out)."""
    h_out, w_out = h_in - k + 1, w_in - k + 1
    p_out = h_out * w_out
    ks = jax.random.split(key, 7)

    def u(kk, shape, fan_in):
        bound = 1.0 / jnp.sqrt(fan_in)
        return jax.random.uniform(kk, shape, jnp.float32, -bound, bound)

    return dict(
        w_conv=u(ks[0], (k, k), k * k),              # Conv2d(1,1,k) weight
        w_deconv=u(ks[1], (k, k), k * k),            # ConvTranspose2d(1,1,k) weight
        w_ih=u(ks[2], (p_out, hidden_dim), hidden_dim),
        w_hh=u(ks[3], (hidden_dim, hidden_dim), hidden_dim),
        b_ih=u(ks[4], (1, hidden_dim), hidden_dim),
        b_hh=u(ks[5], (1, hidden_dim), hidden_dim),
        w_out=u(ks[6], (hidden_dim, p_out), hidden_dim),   # Linear, bias=None
    )


def reference(x, h0, params):
    """Pure-JAX mirror of the PyTorch forward (slice-based conv/deconv)."""
    n, _, t_len, h_in, w_in = x.shape
    k = params["w_conv"].shape[-1]
    h_out, w_out = h_in - k + 1, w_in - k + 1
    p_out = h_out * w_out
    wc, wd = params["w_conv"], params["w_deconv"]

    def conv2d(img):                           # (N,H_in,W_in) -> (N,H_out,W_out)
        y = jnp.zeros((n, h_out, w_out), jnp.float32)
        for ki in range(k):
            for kj in range(k):
                y = y + wc[ki, kj] * img[:, ki:ki + h_out, kj:kj + w_out]
        return y

    def deconv2d(img):                         # (N,H_out,W_out) -> (N,H_in,W_in)
        y = jnp.zeros((n, h_in, w_in), jnp.float32)
        for ki in range(k):
            for kj in range(k):
                y = y.at[:, ki:ki + h_out, kj:kj + w_out].add(wd[ki, kj] * img)
        return y

    xin = x[:, 0]                                          # (N, T, H_in, W_in)
    x_conv_vec = jnp.stack(
        [conv2d(xin[:, t]).reshape(n, p_out) for t in range(t_len)], axis=1)

    ht = h0[0]
    zs = []
    for t in range(t_len):
        ht = jnp.tanh(x_conv_vec[:, t] @ params["w_ih"] + params["b_ih"]
                      + ht @ params["w_hh"] + params["b_hh"])
        zs.append(ht)
    z = jnp.stack(zs, axis=1)                              # (N, T, H)
    s = 1.0 / (1.0 + jnp.exp(-(z @ params["w_out"])))      # (N, T, P_out)
    outs = [deconv2d(s[:, t].reshape(n, h_out, w_out)) for t in range(t_len)]
    out = jnp.stack(outs, axis=1)[:, None]                 # (N,1,T,H_in,W_in)
    return out, ht[None]


if __name__ == "__main__":
    # Small shapes implied by the module's forward:
    #   x: (batch, 1, T, H_in, W_in) normalized to [0, 1), h0: (1, batch, hidden)
    batch, t_len = 2, 8
    h_in = w_in = 16
    kernel_size, hidden_dim = 3, 32

    key = jax.random.PRNGKey(0)
    kx, kh, kp = jax.random.split(key, 3)
    x = jax.random.uniform(kx, (batch, 1, t_len, h_in, w_in), jnp.float32)
    h0 = jax.random.normal(kh, (1, batch, hidden_dim), jnp.float32) * 0.1
    params = init_params(kp, kernel_size, hidden_dim, h_in, w_in)

    prep = prepare_params(params, h_in, w_in)       # one-time parameter prep
    multicore = _use_multicore(batch)               # only True on v7x

    out, h = conv_rnn_forward(x, h0, prep, multicore=multicore)
    jax.block_until_ready((out, h))

    out_ref, h_ref = reference(x, h0, params)
    assert out.shape == (batch, 1, t_len, h_in, w_in)
    assert h.shape == (1, batch, hidden_dim)
    assert jnp.allclose(out, out_ref, atol=1e-4, rtol=1e-4)
    assert jnp.allclose(h, h_ref, atol=1e-4, rtol=1e-4)

    print("KERNEL_OK")
</pallas_src>

<mosaic_0001>
module attributes {stable_mosaic.version = 11 : i64} {
  func.func @_convrnn_kernel(%arg0: memref<16x256xf32, #tpu.memory_space<vmem>>, %arg1: memref<2x1x32xf32, #tpu.memory_space<vmem>>, %arg2: memref<256x32xf32, #tpu.memory_space<vmem>>, %arg3: memref<1x32xf32, #tpu.memory_space<vmem>>, %arg4: memref<32x32xf32, #tpu.memory_space<vmem>>, %arg5: memref<32x196xf32, #tpu.memory_space<vmem>>, %arg6: memref<196x256xf32, #tpu.memory_space<vmem>>, %arg7: memref<16x256xf32, #tpu.memory_space<vmem>>, %arg8: memref<2x1x32xf32, #tpu.memory_space<vmem>>) attributes {dimension_semantics = [], scalar_prefetch = 0 : i64, scratch_operands = 0 : i64, tpu.core_type = #tpu.core_type<tc>} {
    %c0 = arith.constant 0 : index
    %c0_0 = arith.constant 0 : index
    %0 = vector.load %arg0[%c0, %c0_0] : memref<16x256xf32, #tpu.memory_space<vmem>>, vector<16x256xf32>
    %c0_1 = arith.constant 0 : index
    %c0_2 = arith.constant 0 : index
    %1 = vector.load %arg2[%c0_1, %c0_2] : memref<256x32xf32, #tpu.memory_space<vmem>>, vector<256x32xf32>
    %cst = arith.constant dense<0.000000e+00> : vector<16x32xf32>
    %2 = tpu.matmul %0, %1, %cst {dimension_numbers = #tpu.dot_dimension_numbers<[1], [0], [0], [1], [0, 0, 1, 1], [], []>} : vector<16x256xf32>, vector<256x32xf32>, vector<16x32xf32> -> vector<16x32xf32>
    %c0_3 = arith.constant 0 : index
    %c0_4 = arith.constant 0 : index
    %3 = vector.load %arg3[%c0_3, %c0_4] : memref<1x32xf32, #tpu.memory_space<vmem>>, vector<1x32xf32>
    %4 = vector.broadcast %3 : vector<1x32xf32> to vector<16x32xf32>
    %5 = arith.addf %2, %4 : vector<16x32xf32>
    %6 = vector.shape_cast %5 : vector<16x32xf32> to vector<2x8x32xf32>
    %c0_5 = arith.constant 0 : index
    %c0_6 = arith.constant 0 : index
    %7 = vector.load %arg4[%c0_5, %c0_6] : memref<32x32xf32, #tpu.memory_space<vmem>>, vector<32x32xf32>
    %c0_7 = arith.constant 0 : index
    %c0_8 = arith.constant 0 : index
    %c0_9 = arith.constant 0 : index
    %8 = vector.load %arg1[%c0_7, %c0_8, %c0_9] : memref<2x1x32xf32, #tpu.memory_space<vmem>>, vector<2x1x32xf32>
    %9 = vector.shape_cast %8 : vector<2x1x32xf32> to vector<2x32xf32>
    %10 = vector.extract_strided_slice %6 {offsets = [0, 0, 0], sizes = [2, 1, 32], strides = [1, 1, 1]} : vector<2x8x32xf32> to vector<2x1x32xf32>
    %11 = vector.shape_cast %10 : vector<2x1x32xf32> to vector<2x32xf32>
    %cst_10 = arith.constant dense<0.000000e+00> : vector<2x32xf32>
    %12 = tpu.matmul %9, %7, %cst_10 {dimension_numbers = #tpu.dot_dimension_numbers<[1], [0], [0], [1], [0, 0, 1, 1], [], []>} : vector<2x32xf32>, vector<32x32xf32>, vector<2x32xf32> -> vector<2x32xf32>
    %13 = arith.addf %11, %12 : vector<2x32xf32>
    %14 = math.tanh %13 : vector<2x32xf32>
    %15 = vector.extract_strided_slice %6 {offsets = [0, 1, 0], sizes = [2, 1, 32], strides = [1, 1, 1]} : vector<2x8x32xf32> to vector<2x1x32xf32>
    %16 = vector.shape_cast %15 : vector<2x1x32xf32> to vector<2x32xf32>
    %cst_11 = arith.constant dense<0.000000e+00> : vector<2x32xf32>
    %17 = tpu.matmul %14, %7, %cst_11 {dimension_numbers = #tpu.dot_dimension_numbers<[1], [0], [0], [1], [0, 0, 1, 1], [], []>} : vector<2x32xf32>, vector<32x32xf32>, vector<2x32xf32> -> vector<2x32xf32>
    %18 = arith.addf %16, %17 : vector<2x32xf32>
    %19 = math.tanh %18 : vector<2x32xf32>
    %20 = vector.extract_strided_slice %6 {offsets = [0, 2, 0], sizes = [2, 1, 32], strides = [1, 1, 1]} : vector<2x8x32xf32> to vector<2x1x32xf32>
    %21 = vector.shape_cast %20 : vector<2x1x32xf32> to vector<2x32xf32>
    %cst_12 = arith.constant dense<0.000000e+00> : vector<2x32xf32>
    %22 = tpu.matmul %19, %7, %cst_12 {dimension_numbers = #tpu.dot_dimension_numbers<[1], [0], [0], [1], [0, 0, 1, 1], [], []>} : vector<2x32xf32>, vector<32x32xf32>, vector<2x32xf32> -> vector<2x32xf32>
    %23 = arith.addf %21, %22 : vector<2x32xf32>
    %24 = math.tanh %23 : vector<2x32xf32>
    %25 = vector.extract_strided_slice %6 {offsets = [0, 3, 0], sizes = [2, 1, 32], strides = [1, 1, 1]} : vector<2x8x32xf32> to vector<2x1x32xf32>
    %26 = vector.shape_cast %25 : vector<2x1x32xf32> to vector<2x32xf32>
    %cst_13 = arith.constant dense<0.000000e+00> : vector<2x32xf32>
    %27 = tpu.matmul %24, %7, %cst_13 {dimension_numbers = #tpu.dot_dimension_numbers<[1], [0], [0], [1], [0, 0, 1, 1], [], []>} : vector<2x32xf32>, vector<32x32xf32>, vector<2x32xf32> -> vector<2x32xf32>
    %28 = arith.addf %26, %27 : vector<2x32xf32>
    %29 = math.tanh %28 : vector<2x32xf32>
    %30 = vector.extract_strided_slice %6 {offsets = [0, 4, 0], sizes = [2, 1, 32], strides = [1, 1, 1]} : vector<2x8x32xf32> to vector<2x1x32xf32>
    %31 = vector.shape_cast %30 : vector<2x1x32xf32> to vector<2x32xf32>
    %cst_14 = arith.constant dense<0.000000e+00> : vector<2x32xf32>
    %32 = tpu.matmul %29, %7, %cst_14 {dimension_numbers = #tpu.dot_dimension_numbers<[1], [0], [0], [1], [0, 0, 1, 1], [], []>} : vector<2x32xf32>, vector<32x32xf32>, vector<2x32xf32> -> vector<2x32xf32>
    %33 = arith.addf %31, %32 : vector<2x32xf32>
    %34 = math.tanh %33 : vector<2x32xf32>
    %35 = vector.extract_strided_slice %6 {offsets = [0, 5, 0], sizes = [2, 1, 32], strides = [1, 1, 1]} : vector<2x8x32xf32> to vector<2x1x32xf32>
    %36 = vector.shape_cast %35 : vector<2x1x32xf32> to vector<2x32xf32>
    %cst_15 = arith.constant dense<0.000000e+00> : vector<2x32xf32>
    %37 = tpu.matmul %34, %7, %cst_15 {dimension_numbers = #tpu.dot_dimension_numbers<[1], [0], [0], [1], [0, 0, 1, 1], [], []>} : vector<2x32xf32>, vector<32x32xf32>, vector<2x32xf32> -> vector<2x32xf32>
    %38 = arith.addf %36, %37 : vector<2x32xf32>
    %39 = math.tanh %38 : vector<2x32xf32>
    %40 = vector.extract_strided_slice %6 {offsets = [0, 6, 0], sizes = [2, 1, 32], strides = [1, 1, 1]} : vector<2x8x32xf32> to vector<2x1x32xf32>
    %41 = vector.shape_cast %40 : vector<2x1x32xf32> to vector<2x32xf32>
    %cst_16 = arith.constant dense<0.000000e+00> : vector<2x32xf32>
    %42 = tpu.matmul %39, %7, %cst_16 {dimension_numbers = #tpu.dot_dimension_numbers<[1], [0], [0], [1], [0, 0, 1, 1], [], []>} : vector<2x32xf32>, vector<32x32xf32>, vector<2x32xf32> -> vector<2x32xf32>
    %43 = arith.addf %41, %42 : vector<2x32xf32>
    %44 = math.tanh %43 : vector<2x32xf32>
    %45 = vector.extract_strided_slice %6 {offsets = [0, 7, 0], sizes = [2, 1, 32], strides = [1, 1, 1]} : vector<2x8x32xf32> to vector<2x1x32xf32>
    %46 = vector.shape_cast %45 : vector<2x1x32xf32> to vector<2x32xf32>
    %cst_17 = arith.constant dense<0.000000e+00> : vector<2x32xf32>
    %47 = tpu.matmul %44, %7, %cst_17 {dimension_numbers = #tpu.dot_dimension_numbers<[1], [0], [0], [1], [0, 0, 1, 1], [], []>} : vector<2x32xf32>, vector<32x32xf32>, vector<2x32xf32> -> vector<2x32xf32>
    %48 = arith.addf %46, %47 : vector<2x32xf32>
    %49 = math.tanh %48 : vector<2x32xf32>
    %50 = vector.shape_cast %49 : vector<2x32xf32> to vector<2x1x32xf32>
    %c0_18 = arith.constant 0 : index
    %c0_19 = arith.constant 0 : index
    %c0_20 = arith.constant 0 : index
    %51 = vector.load %arg8[%c0_18, %c0_19, %c0_20] : memref<2x1x32xf32, #tpu.memory_space<vmem>>, vector<2x1x32xf32>
    tpu.vector_store %arg8[%c0_18, %c0_19, %c0_20], %50 {strides = array<i32>} : memref<2x1x32xf32, #tpu.memory_space<vmem>>, vector<2x1x32xf32>,
    %52 = vector.shape_cast %14 : vector<2x32xf32> to vector<2x1x32xf32>
    %53 = vector.shape_cast %19 : vector<2x32xf32> to vector<2x1x32xf32>
    %54 = vector.shape_cast %24 : vector<2x32xf32> to vector<2x1x32xf32>
    %55 = vector.shape_cast %29 : vector<2x32xf32> to vector<2x1x32xf32>
    %56 = vector.shape_cast %34 : vector<2x32xf32> to vector<2x1x32xf32>
    %57 = vector.shape_cast %39 : vector<2x32xf32> to vector<2x1x32xf32>
    %58 = vector.shape_cast %44 : vector<2x32xf32> to vector<2x1x32xf32>
    %59 = vector.shape_cast %49 : vector<2x32xf32> to vector<2x1x32xf32>
    %60 = tpu.concatenate %52, %53, %54, %55, %56, %57, %58, %59 in 1 : vector<2x1x32xf32>, vector<2x1x32xf32>, vector<2x1x32xf32>, vector<2x1x32xf32>, vector<2x1x32xf32>, vector<2x1x32xf32>, vector<2x1x32xf32>, vector<2x1x32xf32> -> vector<2x8x32xf32>
    %61 = vector.shape_cast %60 : vector<2x8x32xf32> to vector<16x32xf32>
    %c0_21 = arith.constant 0 : index
    %c0_22 = arith.constant 0 : index
    %62 = vector.load %arg5[%c0_21, %c0_22] : memref<32x196xf32, #tpu.memory_space<vmem>>, vector<32x196xf32>
    %cst_23 = arith.constant dense<0.000000e+00> : vector<16x196xf32>
    %63 = tpu.matmul %61, %62, %cst_23 {dimension_numbers = #tpu.dot_dimension_numbers<[1], [0], [0], [1], [0, 0, 1, 1], [], []>} : vector<16x32xf32>, vector<32x196xf32>, vector<16x196xf32> -> vector<16x196xf32>
    %cst_24 = arith.constant 5.000000e-01 : f32
    %64 = vector.broadcast %cst_24 : f32 to vector<16x196xf32>
    %65 = arith.mulf %64, %63 : vector<16x196xf32>
    %66 = math.tanh %65 : vector<16x196xf32>
    %cst_25 = arith.constant 1.000000e+00 : f32
    %67 = vector.broadcast %cst_25 : f32 to vector<16x196xf32>
    %68 = arith.addf %66, %67 : vector<16x196xf32>
    %cst_26 = arith.constant 5.000000e-01 : f32
    %69 = vector.broadcast %cst_26 : f32 to vector<16x196xf32>
    %70 = arith.mulf %69, %68 : vector<16x196xf32>
    %c0_27 = arith.constant 0 : index
    %c0_28 = arith.constant 0 : index
    %71 = vector.load %arg6[%c0_27, %c0_28] : memref<196x256xf32, #tpu.memory_space<vmem>>, vector<196x256xf32>
    %cst_29 = arith.constant dense<0.000000e+00> : vector<16x256xf32>
    %72 = tpu.matmul %70, %71, %cst_29 {dimension_numbers = #tpu.dot_dimension_numbers<[1], [0], [0], [1], [0, 0, 1, 1], [], []>} : vector<16x196xf32>, vector<196x256xf32>, vector<16x256xf32> -> vector<16x256xf32>
    %c0_30 = arith.constant 0 : index
    %c0_31 = arith.constant 0 : index
    %73 = vector.load %arg7[%c0_30, %c0_31] : memref<16x256xf32, #tpu.memory_space<vmem>>, vector<16x256xf32>
    tpu.vector_store %arg7[%c0_30, %c0_31], %72 {strides = array<i32>} : memref<16x256xf32, #tpu.memory_space<vmem>>, vector<16x256xf32>,
    return
  }
}

</mosaic_0001>

<bundles_post_ra>
// kernel: conv_rnn_forward.1
= control target key start
LH: loop header
LB: loop body
LE: loop exit
PB: predicated region body
PF: predicated region fallthrough
CT: control target
= control target key end

     0   :  { %v1395_v4 = vmov 0.0   ;;  %vm1396_vm0 = vmmov 0   ;;  %s1901_s0 = inlined_call_operand.vmem [shape: f32[16,256], index: 0, kind: input, shape index: {}]   ;;  %s1902_s1 = inlined_call_operand.vmem [shape: f32[2,1,32], index: 1, kind: input, shape index: {}]   ;;  %s1903_s2 = inlined_call_operand.vmem [shape: f32[256,32], index: 2, kind: input, shape index: {}]   ;;  %s1904_s3 = inlined_call_operand.vmem [shape: f32[1,32], index: 3, kind: input, shape index: {}]   ;;  %s1905_s4 = inlined_call_operand.vmem [shape: f32[32,32], index: 4, kind: input, shape index: {}]   ;;  %s1906_s5 = inlined_call_operand.vmem [shape: f32[32,196], index: 5, kind: input, shape index: {}]   ;;  %s1907_s6 = inlined_call_operand.vmem [shape: f32[196,256], index: 6, kind: input, shape index: {}]   ;;  %s1908_s7 = inlined_call_operand.vmem [shape: f32[16,256], index: 7, kind: output, shape index: {0}]   ;;  %s1909_s8 = inlined_call_operand.hbm [shape: f32[2,1,32], index: 8, kind: output, shape index: {1}]  }
   0x1   :  { %v64_v0 = vld [vmem:[%s1903_s2 + $0xf8] sm:$0xff]  ;;  %v63_v2 = vld [vmem:[%s1903_s2 + $0xf0] sm:$0xff]  ;;  %1272 = vmatprep.subr.mxu1 %v1395_v4  ;;  %v62_v5 = vld [vmem:[%s1903_s2 + $0xe8] sm:$0xff]  ;;  %1280 = vmatprep.mubr.msk.f32.mxu1 %vm1396_vm0, %v1395_v4 }
   0x2   :  { %v48_v1 = vld [vmem:[%s1903_s2 + $0x78] sm:$0xff]  ;;  %1161 = vmatprep.subr.mxu0 %v64_v0  ;;  %v47_v3 = vld [vmem:[%s1903_s2 + $0x70] sm:$0xff]  ;;  %v46_v6 = vld [vmem:[%s1903_s2 + $0x68] sm:$0xff] }
   0x3   :  { %1162 = vmatpush3.msra.mxu0 %v48_v1  ;;  %v61_v7 = vld [vmem:[%s1903_s2 + $0xe0] sm:$0xff]  ;;  %v60_v9 = vld [vmem:[%s1903_s2 + $0xd8] sm:$0xff]  ;;  %v59_v11 = vld [vmem:[%s1903_s2 + $0xd0] sm:$0xff] }
   0x4   :  { %1163 = vmatprep.subr.mxu0 %v63_v2  ;;  %v45_v8 = vld [vmem:[%s1903_s2 + $0x60] sm:$0xff]  ;;  %v44_v10 = vld [vmem:[%s1903_s2 + $0x58] sm:$0xff]  ;;  %v43_v12 = vld [vmem:[%s1903_s2 + $0x50] sm:$0xff] }
   0x5   :  { %1164 = vmatpush3.msra.mxu0 %v47_v3  ;;  %v58_v13 = vld [vmem:[%s1903_s2 + $0xc8] sm:$0xff]  ;;  %v1497_v16 = vld [vmem:[%s1905_s4 + $0x18] sm:$0xff]  ;;  %v57_v17 = vld [vmem:[%s1903_s2 + $0xc0] sm:$0xff] }
   0x6   :  { %1165 = vmatprep.subr.mxu0 %v62_v5  ;;  %v30_v14 = vld [vmem:[%s1901_s0 + $0x8] sm:$0xff]  ;;  %1273 = vmatpush3.msra.mxu1 %v1497_v16  ;;  %v41_v18 = vld [vmem:[%s1903_s2 + $0x40] sm:$0xff]  ;;  %v1509_v19 = vld [vmem:[%s1905_s4 + $0x10] sm:$0xff] }
   0x7   :  { %1166 = vmatpush3.msra.mxu0 %v46_v6  ;;  %v42_v15 = vld [vmem:[%s1903_s2 + $0x48] sm:$0xff]  ;;  %136 = vmatprep.mubr.f32.mxu0 %v30_v14  ;;  %v56_v20 = vld [vmem:[%s1903_s2 + $0xb8] sm:$0xff] }
   0x8   :  { %1167 = vmatprep.subr.mxu0 %v61_v7  ;;  %1274 = vmatprep.subr.mxu1 %v1395_v4 }
   0x9   :  { %1168 = vmatpush3.msra.mxu0 %v45_v8  ;;  %1275 = vmatpush3.msra.mxu1 %v1509_v19 }
   0xa   :  { %1169 = vmatprep.subr.mxu0 %v60_v9 }
   0xb   :  { %1170 = vmatpush3.msra.mxu0 %v44_v10 }
   0xc   :  { %1171 = vmatprep.subr.mxu0 %v59_v11 }
   0xd   :  { %1172 = vmatpush3.msra.mxu0 %v43_v12 }
   0xe   :  { %1173 = vmatprep.subr.mxu0 %v58_v13 }
   0xf   :  { %1174 = vmatpush3.msra.mxu0 %v42_v15 }
  0x10   :  { %14 = vsyncpa [#allocation3], 0  ;;  %1175 = vmatprep.subr.mxu0 %v57_v17  ;;  %v40_v21 = vld [vmem:[%s1903_s2 + $0x38] sm:$0xff]  ;;  %v1522_v22 = vld [vmem:[%s1905_s4 + $0x8] sm:$0xff]  ;;  %1276 = vmatprep.subr.mxu1 %v1395_v4  ;;  %v1397_v30 = vmov 1966171168   ;;  %v159_v32 = vlaneseq }
  0x11   :  { %1176 = vmatpush3.msra.mxu0 %v41_v18  ;;  %v55_v23 = vld [vmem:[%s1903_s2 + $0xb0] sm:$0xff]  ;;  %1277 = vmatpush3.msra.mxu1 %v1522_v22  ;;  %v1535_v25 = vld [vmem:[%s1905_s4] sm:$0xff]  ;;  %v54_v26 = vld [vmem:[%s1903_s2 + $0xa8] sm:$0xff]  ;;  %v157_v31 = vunpack.c.l.s4 %v1397_v30  ;;  %vm170_vm1 = vcmask 261120   ;;  %vm254_vm2 = vcmask 1041409   ;;  %vm854_vm3 = vcmask 1040384  }
  0x12   :  { %1177 = vmatprep.subr.mxu0 %v56_v20  ;;  %v39_v24 = vld [vmem:[%s1903_s2 + $0x30] sm:$0xff]  ;;  %1278 = vmatprep.subr.mxu1 %v1395_v4  ;;  %v38_v27 = vld [vmem:[%s1903_s2 + $0x28] sm:$0xff]  ;;  %v53_v28 = vld [vmem:[%s1903_s2 + $0xa0] sm:$0xff]  ;;  %v160_v38 = vshrl.u32 %v159_v32, 7  ;;  %vm857_vm4 = vcmask 1041408   ;;  %vm860_vm5 = vcmask 1042432  }
  0x13   :  { %1178 = vmatpush3.msra.mxu0 %v40_v21  ;;  %1279 = vmatpush3.msra.mxu1 %v1535_v25  ;;  %v37_v29 = vld [vmem:[%s1903_s2 + $0x20] sm:$0xff]  ;;  %v52_v33 = vld [vmem:[%s1903_s2 + $0x98] sm:$0xff]  ;;  %v51_v35 = vld [vmem:[%s1903_s2 + $0x90] sm:$0xff]  ;;  %v158_v37 = vunpack.c.0.s8 %v157_v31  ;;  %vm863_vm6 = vcmask 1043456   ;;  %vm866_vm7 = vcmask 1044480   ;;  %vm869_vm8 = vcmask 1045504  }
  0x14   :  { %1179 = vmatprep.subr.mxu0 %v55_v23  ;;  %1294 = vmatprep.subr.mxu1 %v1395_v4  ;;  %v36_v34 = vld [vmem:[%s1903_s2 + $0x18] sm:$0xff]  ;;  %v35_v36 = vld [vmem:[%s1903_s2 + $0x10] sm:$0xff]  ;;  %v50_v39 = vld [vmem:[%s1903_s2 + $0x88] sm:$0xff]  ;;  %vm872_vm9 = vcmask 1046528   ;;  %vm851_vm10 = vcmask 261127   ;;  %vm1032_vm11 = vcmask 556032  }
  0x15   :  { %1180 = vmatpush3.msra.mxu0 %v39_v24  ;;  %v151_v40 = vld [vmem:[%s1902_s1] sm:$0x1]  ;;  %v152_v41 = vld [vmem:[%s1902_s1 + $0x1] sm:$0x1]  ;;  %v34_v42 = vld [vmem:[%s1903_s2 + $0x8] sm:$0xff]  ;;  %v161_v46 = vsub.s32 %v158_v37, %v160_v38 }
  0x16   :  { %1181 = vmatprep.subr.mxu0 %v54_v26  ;;  %v49_v43 = vld [vmem:[%s1903_s2 + $0x80] sm:$0xff]  ;;  %v155_v45 = vcombine.low %v151_v40, %v152_v41  ;;  %v32_v48 = vld [vmem:[%s1901_s0 + $0x18] sm:$0xff]  ;;  %v31_v50 = vld [vmem:[%s1901_s0 + $0x10] sm:$0xff] }
  0x17   :  { %1182 = vmatpush3.msra.mxu0 %v38_v27  ;;  %v33_v44 = vld [vmem:[%s1903_s2] sm:$0xff] }
  0x18   :  { %1183 = vmatprep.subr.mxu0 %v53_v28  ;;  %v29_v47 = vld [vmem:[%s1901_s0] sm:$0xff]  ;;  %v162_v49 = vrot.slane %v155_v45, %v161_v46 }
  0x19   :  { %1184 = vmatpush3.msra.mxu0 %v37_v29  ;;  %v1146_v56 = vld [vmem:[%s1904_s3] ss:$0 sm:$0xff] }
  0x1a   :  { %1185 = vmatprep.subr.mxu0 %v52_v33  ;;  %v169_v51 = vrot.slane %v162_v49, %v161_v46 }
  0x1b   :  { %1186 = vmatpush3.msra.mxu0 %v36_v34 }
  0x1c   :  { %1187 = vmatprep.subr.mxu0 %v51_v35 }
  0x1d   :  { %1188 = vmatpush3.msra.mxu0 %v35_v36 }
  0x1e   :  { %1189 = vmatprep.subr.mxu0 %v50_v39 }
  0x1f   :  { %1190 = vmatpush3.msra.mxu0 %v34_v42 }
  0x20   :  { %1191 = vmatprep.subr.mxu0 %v49_v43 }
  0x21   :  { %1192 = vmatpush3.msra.mxu0 %v33_v44 }
  0x22   :  { %137 = vmatmul.mubr.f32.vlgmr.msra.gmra.mxu0 %v29_v47  ;;  %1239 = vmatprep.subr.mxu0 %v1395_v4 }
  0x23   :  { %1240 = vmatpush3.msra.mxu0 %v1497_v16  ;;  %141 = vmatprep.mubr.f32.mxu0 %v32_v48 }
  0x24   :  { %1241 = vmatprep.subr.mxu0 %v1395_v4 }
  0x25   :  { %1242 = vmatpush3.msra.mxu0 %v1509_v19 }
  0x26   :  { %142 = vmatmul.mubr.f32.gmra.mxu0 %v31_v50  ;;  %1243 = vmatprep.subr.mxu0 %v1395_v4 }
  0x27   :  { %1244 = vmatpush3.msra.mxu0 %v1522_v22  ;;  %1247 = vmatprep.mubr.msk.f32.mxu0 %vm1396_vm0, %v1395_v4 }
  0x28   :  { %1245 = vmatprep.subr.mxu0 %v1395_v4 }
  0x29   :  { %1246 = vmatpush3.msra.mxu0 %v1535_v25 }
  0x2a   :  { %1248 = vmatmul.mubr.msk.f32.vlgmr.msra.gmra.mxu0 %vm170_vm1, %v169_v51  ;;  %1250 = vmatprep.subr.mxu0 %v1395_v4 }
  0x2b   :  { %1251 = vmatpush3.msra.mxu0 %v1497_v16  ;;  %1258 = vmatprep.mubr.msk.f32.mxu0 %vm1396_vm0, %v1395_v4 }
  0x2c   :  { %1252 = vmatprep.subr.mxu0 %v1395_v4 }
  0x2d   :  { %1253 = vmatpush3.msra.mxu0 %v1509_v19 }
  0x2e   :  { %1254 = vmatprep.subr.mxu0 %v1395_v4 }
  0x2f   :  { %1255 = vmatpush3.msra.mxu0 %v1522_v22 }
  0x30   :  { %1256 = vmatprep.subr.mxu0 %v1395_v4 }
  0x31   :  { %1257 = vmatpush3.msra.mxu0 %v1535_v25 }
  0x32   :  { %1261 = vmatprep.subr.mxu0 %v1395_v4 }
  0xe2   :  { %v1193_v52 = vpop.f32.mrf.mxu0 }
  0xe4   :  { %v1194_v53 = vpop.f32.mrf.mxu0 }
  0xe5   :  { %v1195_v55 = vadd.f32 %v1194_v53, %v1193_v52 }
  0xe6   :  { %v1196_v54 = vpop.f32.mrf.mxu0 }
  0xe7   :  { %v1616_v60 = vadd.f32 %v1195_v55, %v1146_v56 }
  0xe8   :  { %v1197_v57 = vpop.f32.mrf.mxu0 }
  0xe9   :  { %v1198_v58 = vadd.f32 %v1197_v57, %v1196_v54 }
  0xea   :  { %v239_v59 = vpop.f32.mrf.mxu0 }
  0xeb   :  { %v1618_v61 = vadd.f32 %v1198_v58, %v1146_v56  ;;  %v244_v62 = vrot.slane %v239_v59, 1  ;;  %v247_v0 = vadd.f32 %v239_v59, %v1616_v60 }
  0xec   :  { %v1249_v63 = vpop.f32.mrf.mxu0 }
  0xed   :  { %v248_v1 = vadd.f32 %v244_v62, %v1618_v61 }
  0xef   :  { %1333 = vtanh.f32 %v248_v1 }
  0xf0   :  { %1335 = vtanh.f32 %v247_v0 }
  0xfc   :  { %v1334_v2 = vpop.eup %1333 }
  0xfd   :  { %v253_v3 = vrot.slane %v1334_v2, 7  ;;  %v1336_v5 = vpop.eup %1335 }
  0xff   :  { %v255_v6 = vsel %vm254_vm2, %v253_v3, %v1336_v5 }
 0x100   :  { %1259 = vmatmul.mubr.msk.f32.vlgmr.msra.gmra.mxu0 %vm170_vm1, %v255_v6 }
 0x101   :  { %1262 = vmatpush3.msra.mxu0 %v1497_v16  ;;  %1269 = vmatprep.mubr.msk.f32.mxu0 %vm1396_vm0, %v1395_v4 }
 0x102   :  { %1263 = vmatprep.subr.mxu0 %v1395_v4 }
 0x103   :  { %1264 = vmatpush3.msra.mxu0 %v1509_v19 }
 0x104   :  { %1265 = vmatprep.subr.mxu0 %v1395_v4 }
 0x105   :  { %1266 = vmatpush3.msra.mxu0 %v1522_v22 }
 0x106   :  { %1267 = vmatprep.subr.mxu0 %v1395_v4 }
 0x107   :  { %1268 = vmatpush3.msra.mxu0 %v1535_v25 }
 0x108   :  { %1283 = vmatprep.subr.mxu0 %v1395_v4 }
 0x1c0   :  { %v324_v7 = vpop.f32.mrf.mxu0 }
 0x1c1   :  { %v329_v8 = vrot.slane %v324_v7, 7  ;;  %v333_v11 = vadd.f32 %v324_v7, %v1618_v61 }
 0x1c2   :  { %v1260_v9 = vpop.f32.mrf.mxu0 }
 0x1c3   :  { %v332_v10 = vadd.f32 %v329_v8, %v1616_v60 }
 0x1c5   :  { %1337 = vtanh.f32 %v332_v10 }
 0x1c6   :  { %1339 = vtanh.f32 %v333_v11 }
 0x1d2   :  { %v1338_v12 = vpop.eup %1337 }
 0x1d3   :  { %v338_v13 = vrot.slane %v1338_v12, 1  ;;  %v1340_v14 = vpop.eup %1339  ;;  %v855_v27 = vsel %vm854_vm3, %v1336_v5, %v1338_v12 }
 0x1d4   :  { %v856_v31 = vsel %vm854_vm3, %v1334_v2, %v1340_v14 }
 0x1d5   :  { %v339_v15 = vsel %vm254_vm2, %v1340_v14, %v338_v13 }
 0x1d6   :  { %1270 = vmatmul.mubr.msk.f32.vlgmr.msra.gmra.mxu0 %vm170_vm1, %v339_v15 }
 0x1d7   :  { %1284 = vmatpush3.msra.mxu0 %v1497_v16  ;;  %1291 = vmatprep.mubr.msk.f32.mxu0 %vm1396_vm0, %v1395_v4 }
 0x1d8   :  { %1285 = vmatprep.subr.mxu0 %v1395_v4 }
 0x1d9   :  { %1286 = vmatpush3.msra.mxu0 %v1509_v19 }
 0x1da   :  { %1287 = vmatprep.subr.mxu0 %v1395_v4 }
 0x1db   :  { %1288 = vmatpush3.msra.mxu0 %v1522_v22 }
 0x1dc   :  { %1289 = vmatprep.subr.mxu0 %v1395_v4 }
 0x1dd   :  { %1290 = vmatpush3.msra.mxu0 %v1535_v25 }
 0x1de   :  { %1305 = vmatprep.subr.mxu0 %v1395_v4 }
 0x296   :  { %v408_v17 = vpop.f32.mrf.mxu0 }
 0x297   :  { %v413_v18 = vrot.slane %v408_v17, 6  ;;  %v414_v20 = vrot.slane %v408_v17, 7 }
 0x298   :  { %v1271_v21 = vpop.f32.mrf.mxu0 }
 0x299   :  { %v417_v23 = vadd.f32 %v413_v18, %v1616_v60  ;;  %v418_v24 = vadd.f32 %v414_v20, %v1618_v61 }
 0x29b   :  { %1341 = vtanh.f32 %v417_v23 }
 0x29c   :  { %1343 = vtanh.f32 %v418_v24 }
 0x2a8   :  { %v1342_v26 = vpop.eup %1341 }
 0x2a9   :  { %v1344_v28 = vpop.eup %1343  ;;  %v423_v29 = vrot.slane %v1342_v26, 2  ;;  %v858_v30 = vsel %vm857_vm4, %v855_v27, %v1342_v26  ;;  %v882_v26 = vld [vmem:[%s1906_s5 + $0x38] sm:$0xff]  ;;  %v881_v27 = vld [vmem:[%s1906_s5 + $0x30] sm:$0xff] }
 0x2aa   :  { %v424_v32 = vrot.slane %v1344_v28, 1  ;;  %v859_v33 = vsel %vm857_vm4, %v856_v31, %v1344_v28  ;;  %v880_v28 = vld [vmem:[%s1906_s5 + $0x28] sm:$0xff]  ;;  %v877_v31 = vld [vmem:[%s1906_s5 + $0x10] sm:$0xff] }
 0x2ac   :  { %v425_v34 = vsel %vm254_vm2, %v424_v32, %v423_v29  ;;  %v879_v29 = vld [vmem:[%s1906_s5 + $0x20] sm:$0xff]  ;;  %v876_v32 = vld [vmem:[%s1906_s5 + $0x8] sm:$0xff] }
 0x2ad   :  { %1281 = vmatmul.mubr.msk.f32.vlgmr.msra.gmra.mxu1 %vm170_vm1, %v425_v34  ;;  %v1013_v34 = vld [vmem:[%s1907_s6 + $0xf8] sm:$0xff] }
 0x2ae   :  { %1295 = vmatpush3.msra.mxu1 %v1497_v16  ;;  %1302 = vmatprep.mubr.msk.f32.mxu1 %vm1396_vm0, %v1395_v4 }
 0x2af   :  { %1296 = vmatprep.subr.mxu1 %v1395_v4 }
 0x2b0   :  { %1297 = vmatpush3.msra.mxu1 %v1509_v19 }
 0x2b1   :  { %1298 = vmatprep.subr.mxu1 %v1395_v4 }
 0x2b2   :  { %1299 = vmatpush3.msra.mxu1 %v1522_v22 }
 0x2b3   :  { %1300 = vmatprep.subr.mxu1 %v1395_v4 }
 0x2b4   :  { %1301 = vmatpush3.msra.mxu1 %v1535_v25 }
 0x2b5   :  { %1316 = vmatprep.subr.mxu1 %v1395_v4 }
 0x36d   :  { %v494_v35 = vpop.f32.mrf.mxu1 }
 0x36e   :  { %v499_v36 = vrot.slane %v494_v35, 5  ;;  %v500_v37 = vrot.slane %v494_v35, 6  ;;  %v1012_v35 = vld [vmem:[%s1907_s6 + $0xf0] sm:$0xff] }
 0x36f   :  { %v1282_v38 = vpop.f32.mrf.mxu1 }
 0x370   :  { %v503_v39 = vadd.f32 %v499_v36, %v1616_v60  ;;  %v504_v40 = vadd.f32 %v500_v37, %v1618_v61  ;;  %v1011_v36 = vld [vmem:[%s1907_s6 + $0xe8] sm:$0xff]  ;;  %v1010_v37 = vld [vmem:[%s1907_s6 + $0xe0] sm:$0xff]  ;;  %v1009_v38 = vld [vmem:[%s1907_s6 + $0xd8] sm:$0xff] }
 0x372   :  { %1345 = vtanh.f32 %v503_v39  ;;  %v1008_v39 = vld [vmem:[%s1907_s6 + $0xd0] sm:$0xff] }
 0x373   :  { %1347 = vtanh.f32 %v504_v40  ;;  %v1007_v40 = vld [vmem:[%s1907_s6 + $0xc8] sm:$0xff] }
 0x37f   :  { %v1346_v41 = vpop.eup %1345 }
 0x380   :  { %v1348_v42 = vpop.eup %1347  ;;  %v509_v43 = vrot.slane %v1346_v41, 3  ;;  %v861_v44 = vsel %vm860_vm5, %v858_v30, %v1346_v41  ;;  %v878_v30 = vld [vmem:[%s1906_s5 + $0x18] sm:$0xff]  ;;  %v1006_v41 = vld [vmem:[%s1907_s6 + $0xc0] sm:$0xff] }
 0x381   :  { %v510_v45 = vrot.slane %v1348_v42, 2  ;;  %v862_v46 = vsel %vm860_vm5, %v859_v33, %v1348_v42  ;;  %v875_v33 = vld [vmem:[%s1906_s5] sm:$0xff]  ;;  %v1005_v42 = vld [vmem:[%s1907_s6 + $0xb8] sm:$0xff] }
 0x383   :  { %v511_v47 = vsel %vm254_vm2, %v510_v45, %v509_v43  ;;  %v1004_v43 = vld [vmem:[%s1907_s6 + $0xb0] sm:$0xff]  ;;  %v1002_v45 = vld [vmem:[%s1907_s6 + $0xa0] sm:$0xff] }
 0x384   :  { %1292 = vmatmul.mubr.msk.f32.vlgmr.msra.gmra.mxu0 %vm170_vm1, %v511_v47  ;;  %v1000_v47 = vld [vmem:[%s1907_s6 + $0x90] sm:$0xff] }
 0x385   :  { %1306 = vmatpush3.msra.mxu0 %v1497_v16  ;;  %1313 = vmatprep.mubr.msk.f32.mxu0 %vm1396_vm0, %v1395_v4 }
 0x386   :  { %1307 = vmatprep.subr.mxu0 %v1395_v4 }
 0x387   :  { %1308 = vmatpush3.msra.mxu0 %v1509_v19 }
 0x388   :  { %1309 = vmatprep.subr.mxu0 %v1395_v4 }
 0x389   :  { %1310 = vmatpush3.msra.mxu0 %v1522_v22 }
 0x38a   :  { %1311 = vmatprep.subr.mxu0 %v1395_v4 }
 0x38b   :  { %1312 = vmatpush3.msra.mxu0 %v1535_v25 }
 0x38c   :  { %913 = vmatprep.subr.mxu0 %v882_v26  ;;  %v1017_v26 = vld [vmem:[%s1907_s6 + $0x118] sm:$0xff] }
 0x444   :  { %v580_v48 = vpop.f32.mrf.mxu0 }
 0x445   :  { %v585_v49 = vrot.slane %v580_v48, 4  ;;  %v586_v50 = vrot.slane %v580_v48, 5  ;;  %v999_v48 = vld [vmem:[%s1907_s6 + $0x88] sm:$0xff] }
 0x446   :  { %v1293_v51 = vpop.f32.mrf.mxu0 }
 0x447   :  { %v589_v52 = vadd.f32 %v585_v49, %v1616_v60  ;;  %v590_v53 = vadd.f32 %v586_v50, %v1618_v61  ;;  %v998_v49 = vld [vmem:[%s1907_s6 + $0x80] sm:$0xff]  ;;  %v997_v50 = vld [vmem:[%s1907_s6 + $0x78] sm:$0xff]  ;;  %v996_v51 = vld [vmem:[%s1907_s6 + $0x70] sm:$0xff] }
 0x449   :  { %1349 = vtanh.f32 %v589_v52  ;;  %v995_v52 = vld [vmem:[%s1907_s6 + $0x68] sm:$0xff] }
 0x44a   :  { %1351 = vtanh.f32 %v590_v53  ;;  %v994_v53 = vld [vmem:[%s1907_s6 + $0x60] sm:$0xff] }
 0x456   :  { %v1350_v54 = vpop.eup %1349 }
 0x457   :  { %v1352_v55 = vpop.eup %1351  ;;  %v595_v56 = vrot.slane %v1350_v54, 4  ;;  %v864_v57 = vsel %vm863_vm6, %v861_v44, %v1350_v54  ;;  %v1003_v44 = vld [vmem:[%s1907_s6 + $0xa8] sm:$0xff]  ;;  %v993_v54 = vld [vmem:[%s1907_s6 + $0x58] sm:$0xff] }
 0x458   :  { %v596_v58 = vrot.slane %v1352_v55, 3  ;;  %v865_v59 = vsel %vm863_vm6, %v862_v46, %v1352_v55  ;;  %v1001_v46 = vld [vmem:[%s1907_s6 + $0x98] sm:$0xff]  ;;  %v992_v55 = vld [vmem:[%s1907_s6 + $0x50] sm:$0xff] }
 0x45a   :  { %v597_v62 = vsel %vm254_vm2, %v596_v58, %v595_v56  ;;  %v991_v56 = vld [vmem:[%s1907_s6 + $0x48] sm:$0xff]  ;;  %v989_v58 = vld [vmem:[%s1907_s6 + $0x38] sm:$0xff] }
 0x45b   :  { %1303 = vmatmul.mubr.msk.f32.vlgmr.msra.gmra.mxu1 %vm170_vm1, %v597_v62 }
 0x45c   :  { %1317 = vmatpush3.msra.mxu1 %v1497_v16  ;;  %1324 = vmatprep.mubr.msk.f32.mxu1 %vm1396_vm0, %v1395_v4 }
 0x45d   :  { %1318 = vmatprep.subr.mxu1 %v1395_v4 }
 0x45e   :  { %1319 = vmatpush3.msra.mxu1 %v1509_v19 }
 0x45f   :  { %1320 = vmatprep.subr.mxu1 %v1395_v4 }
 0x460   :  { %1321 = vmatpush3.msra.mxu1 %v1522_v22 }
 0x461   :  { %1322 = vmatprep.subr.mxu1 %v1395_v4 }
 0x462   :  { %1323 = vmatpush3.msra.mxu1 %v1535_v25 }
 0x463   :  { %1045 = vmatprep.subr.mxu1 %v1013_v34 }
 0x51b   :  { %v666_v63 = vpop.f32.mrf.mxu1 }
 0x51c   :  { %v671_v0 = vrot.slane %v666_v63, 3  ;;  %v672_v1 = vrot.slane %v666_v63, 4 }
 0x51d   :  { %v1304_v2 = vpop.f32.mrf.mxu1 }
 0x51e   :  { %v675_v16 = vadd.f32 %v671_v0, %v1616_v60  ;;  %v676_v3 = vadd.f32 %v672_v1, %v1618_v61 }
 0x520   :  { %1353 = vtanh.f32 %v675_v16 }
 0x521   :  { %1355 = vtanh.f32 %v676_v3 }
 0x52d   :  { %v1354_v19 = vpop.eup %1353 }
 0x52e   :  { %v1356_v5 = vpop.eup %1355  ;;  %v681_v6 = vrot.slane %v1354_v19, 5  ;;  %v867_v7 = vsel %vm866_vm7, %v864_v57, %v1354_v19  ;;  %v990_v57 = vld [vmem:[%s1907_s6 + $0x40] sm:$0xff] }
 0x52f   :  { %v682_v22 = vrot.slane %v1356_v5, 4  ;;  %v868_v8 = vsel %vm866_vm7, %v865_v59, %v1356_v5  ;;  %v988_v59 = vld [vmem:[%s1907_s6 + $0x30] sm:$0xff] }
 0x531   :  { %v683_v9 = vsel %vm254_vm2, %v682_v22, %v681_v6  ;;  %v983_v22 = vld [vmem:[%s1907_s6 + $0x8] sm:$0xff] }
 0x532   :  { %1314 = vmatmul.mubr.msk.f32.vlgmr.msra.gmra.mxu0 %vm170_vm1, %v683_v9  ;;  %v1031_v9 = vld [vmem:[%s1907_s6 + $0x188] sm:$0xf] }
 0x533   :  { %953 = vmatprep.mubr.f32.mxu0 %v1395_v4  ;;  %914 = vmatpush1.msra.mxu0 %v881_v27  ;;  %v1016_v27 = vld [vmem:[%s1907_s6 + $0x110] sm:$0xff] }
 0x534   :  { %915 = vmatprep.subr.mxu0 %v880_v28  ;;  %v1015_v28 = vld [vmem:[%s1907_s6 + $0x108] sm:$0xff] }
 0x535   :  { %916 = vmatpush1.msra.mxu0 %v879_v29  ;;  %v1014_v29 = vld [vmem:[%s1907_s6 + $0x100] sm:$0xff] }
 0x536   :  { %917 = vmatprep.subr.mxu0 %v878_v30 }
 0x537   :  { %918 = vmatpush1.msra.mxu0 %v877_v31 }
 0x538   :  { %919 = vmatprep.subr.mxu0 %v876_v32 }
 0x539   :  { %920 = vmatpush1.msra.mxu0 %v875_v33 }
 0x5f2   :  { %v752_v25 = vpop.f32.mrf.mxu0 }
 0x5f3   :  { %v757_v10 = vrot.slane %v752_v25, 2  ;;  %v758_v11 = vrot.slane %v752_v25, 3  ;;  %v1030_v25 = vld [vmem:[%s1907_s6 + $0x180] sm:$0xf] }
 0x5f4   :  { %v1315_v12 = vpop.f32.mrf.mxu0 }
 0x5f5   :  { %v761_v13 = vadd.f32 %v757_v10, %v1616_v60  ;;  %v762_v14 = vadd.f32 %v758_v11, %v1618_v61  ;;  %v1029_v10 = vld [vmem:[%s1907_s6 + $0x178] sm:$0xff]  ;;  %v1028_v11 = vld [vmem:[%s1907_s6 + $0x170] sm:$0xff]  ;;  %v1027_v12 = vld [vmem:[%s1907_s6 + $0x168] sm:$0xff] }
 0x5f7   :  { %1357 = vtanh.f32 %v761_v13  ;;  %v1026_v13 = vld [vmem:[%s1907_s6 + $0x160] sm:$0xff] }
 0x5f8   :  { %1359 = vtanh.f32 %v762_v14  ;;  %v1025_v14 = vld [vmem:[%s1907_s6 + $0x158] sm:$0xff] }
 0x604   :  { %v1358_v15 = vpop.eup %1357 }
 0x605   :  { %v1360_v17 = vpop.eup %1359  ;;  %v767_v18 = vrot.slane %v1358_v15, 6  ;;  %v1697_v20 = vsel %vm869_vm8, %v867_v7, %v1358_v15  ;;  %v985_v7 = vld [vmem:[%s1907_s6 + $0x18] sm:$0xff]  ;;  %v1024_v15 = vld [vmem:[%s1907_s6 + $0x150] sm:$0xff] }
 0x606   :  { %v768_v21 = vrot.slane %v1360_v17, 5  ;;  %v1699_v23 = vsel %vm869_vm8, %v868_v8, %v1360_v17  ;;  %v982_v8 = vld [vmem:[%s1907_s6] sm:$0xff]  ;;  %v1023_v17 = vld [vmem:[%s1907_s6 + $0x148] sm:$0xff] }
 0x608   :  { %v769_v24 = vsel %vm254_vm2, %v768_v21, %v767_v18  ;;  %v1022_v18 = vld [vmem:[%s1907_s6 + $0x140] sm:$0xff]  ;;  %v1020_v21 = vld [vmem:[%s1907_s6 + $0x130] sm:$0xff] }
 0x609   :  { %1325 = vmatmul.mubr.msk.f32.vlgmr.msra.gmra.mxu1 %vm170_vm1, %v769_v24  ;;  %v1018_v24 = vld [vmem:[%s1907_s6 + $0x120] sm:$0xff] }
 0x60a   :  { %1046 = vmatpush1.msra.mxu1 %v1012_v35 }
 0x60b   :  { %1047 = vmatprep.subr.mxu1 %v1011_v36 }
 0x60c   :  { %1048 = vmatpush1.msra.mxu1 %v1010_v37 }
 0x60d   :  { %1049 = vmatprep.subr.mxu1 %v1009_v38 }
 0x60e   :  { %1050 = vmatpush1.msra.mxu1 %v1008_v39 }
 0x60f   :  { %1051 = vmatprep.subr.mxu1 %v1007_v40 }
 0x610   :  { %1052 = vmatpush1.msra.mxu1 %v1006_v41 }
 0x611   :  { %1053 = vmatprep.subr.mxu1 %v1005_v42 }
 0x612   :  { %1054 = vmatpush1.msra.mxu1 %v1004_v43 }
 0x613   :  { %1055 = vmatprep.subr.mxu1 %v1003_v44 }
 0x614   :  { %1056 = vmatpush1.msra.mxu1 %v1002_v45 }
 0x615   :  { %1057 = vmatprep.subr.mxu1 %v1001_v46 }
 0x616   :  { %1058 = vmatpush1.msra.mxu1 %v1000_v47 }
 0x617   :  { %1059 = vmatprep.subr.mxu1 %v999_v48 }
 0x618   :  { %1060 = vmatpush1.msra.mxu1 %v998_v49 }
 0x619   :  { %1061 = vmatprep.subr.mxu1 %v997_v50 }
 0x61a   :  { %1062 = vmatpush1.msra.mxu1 %v996_v51 }
 0x61b   :  { %1063 = vmatprep.subr.mxu1 %v995_v52 }
 0x61c   :  { %1064 = vmatpush1.msra.mxu1 %v994_v53 }
 0x61d   :  { %1065 = vmatprep.subr.mxu1 %v993_v54 }
 0x61e   :  { %1066 = vmatpush1.msra.mxu1 %v992_v55 }
 0x61f   :  { %1067 = vmatprep.subr.mxu1 %v991_v56 }
 0x620   :  { %1068 = vmatpush1.msra.mxu1 %v990_v57 }
 0x621   :  { %1069 = vmatprep.subr.mxu1 %v989_v58 }
 0x622   :  { %1070 = vmatpush1.msra.mxu1 %v988_v59 }
 0x6c9   :  { %v838_v62 = vpop.f32.mrf.mxu1 }
 0x6ca   :  { %v843_v63 = vrot.slane %v838_v62, 1  ;;  %v844_v0 = vrot.slane %v838_v62, 2 }
 0x6cb   :  { %v1326_v1 = vpop.f32.mrf.mxu1 }
 0x6cc   :  { %v847_v2 = vadd.f32 %v843_v63, %v1616_v60  ;;  %v848_v16 = vadd.f32 %v844_v0, %v1618_v61  ;;  %v987_v60 = vld [vmem:[%s1907_s6 + $0x28] sm:$0xff]  ;;  %v986_v61 = vld [vmem:[%s1907_s6 + $0x20] sm:$0xff] }
 0x6cd   :  { %1071 = vmatprep.subr.mxu1 %v987_v60 }
 0x6ce   :  { %1361 = vtanh.f32 %v847_v2  ;;  %1072 = vmatpush1.msra.mxu1 %v986_v61 }
 0x6cf   :  { %1363 = vtanh.f32 %v848_v16  ;;  %1073 = vmatprep.subr.mxu1 %v985_v7 }
 0x6db   :  { %v1362_v3 = vpop.eup %1361 }
 0x6dc   :  { %v1364_v19 = vpop.eup %1363  ;;  %v873_v5 = vsel %vm872_vm9, %v1697_v20, %v1362_v3  ;;  %852 = vst.msk [vmem:[#allocation2 - $0x7] sm:$0x80] %vm851_vm10, %v1362_v3  ;;  %v1021_v20 = vld [vmem:[%s1907_s6 + $0x138] sm:$0xff] }
 0x6dd   :  { %1155 = vmatmul.mubr.msk.f32.vlgmr.msra.gmra.mxu0 %vm170_vm1, %v873_v5  ;;  %853 = vst.msk [vmem:[#allocation2 - $0x6] sm:$0x80] %vm851_vm10, %v1364_v19  ;;  %v874_v6 = vsel %vm872_vm9, %v1699_v23, %v1364_v19  ;;  %v1019_v23 = vld [vmem:[%s1907_s6 + $0x128] sm:$0xff] }
 0x6de   :  { %959 = vmatprep.mubr.f32.mxu0 %v1395_v4  ;;  %v984_v4 = vld [vmem:[%s1907_s6 + $0x10] sm:$0xff]  ;;  %s1398_s6 = smov [#allocation2]  }
 0x6df   :  { %1074 = vmatpush1.msra.mxu1 %v984_v4  ;;  %s1133_s23 = sshll.u32 %s1398_s6, 4  ;;  %s1134_s23 = int_to_ptr.vmem [resolvable:$true] %s1133_s23 }
 0x6e0   :  { %1075 = vmatprep.subr.mxu1 %v983_v22  ;;  %s1373_s24 = scalar_lea.vmem %s1134_s23, 32  ;;  %p1378_p1 = scmp.lt.s32.totalorder %s1134_s23, %s1134_s23 }
 0x6e1   :  { %1156 = vmatmul.mubr.msk.f32.gmra.mxu0 %vm170_vm1, %v874_v6  ;;  %1076 = vmatpush1.msra.mxu1 %v982_v8  ;;  %p1374_p0 = scmp.ne.s32.totalorder %s1134_s23, %s1373_s24  ;;  %p1379_p2 = scmp.lt.s32.totalorder %s1373_s24, %s1373_s24 }
 0x6e2   :  { %1157 = vmatprep.subr.msk.mxu1 %vm863_vm6, %v1031_v9 }
 0x6e3   :  { %1158 = vmatpush2.msk.msra.mxu1 %vm863_vm6, %v1030_v25  ;;  %p1380_p3 = por %p1379_p2, %p1378_p1 }
 0x6e4   :  { %1093 = vmatprep.subr.mxu1 %v1029_v10 }
 0x6e5   :  { %1094 = vmatpush2.msra.mxu1 %v1028_v11  ;;  %p1381_p4 = pnand %p1380_p3, %p1374_p0 }
 0x6e6   :  { %1095 = vmatprep.subr.mxu1 %v1027_v12 }
 0x6e7   :  { %1096 = vmatpush2.msra.mxu1 %v1026_v13 }
 0x6e8   :  { %1097 = vmatprep.subr.mxu1 %v1025_v14 }
 0x6e9   :  { %1098 = vmatpush2.msra.mxu1 %v1024_v15 }
 0x6ea   :  { %1099 = vmatprep.subr.mxu1 %v1023_v17 }
 0x6eb   :  { %1100 = vmatpush2.msra.mxu1 %v1022_v18 }
 0x6ec   :  { %1101 = vmatprep.subr.mxu1 %v1021_v20 }
 0x6ed   :  { %1102 = vmatpush2.msra.mxu1 %v1020_v21 }
 0x6ee   :  { %1103 = vmatprep.subr.mxu1 %v1019_v23 }
 0x6ef   :  { %1104 = vmatpush2.msra.mxu1 %v1018_v24 }
 0x6f0   :  { %1105 = vmatprep.subr.mxu1 %v1017_v26 }
 0x6f1   :  { %1106 = vmatpush2.msra.mxu1 %v1016_v27 }
 0x6f2   :  { %1107 = vmatprep.subr.mxu1 %v1015_v28 }
 0x6f3   :  { %1108 = vmatpush2.msra.mxu1 %v1014_v29 }
 0x79d   :  { %v955_v30 = vpop.f32.mrf.mxu0 }
 0x79e   :  { %v966_v31 = vmul.f32 0.5, %v955_v30 }
 0x79f   :  { %v957_v32 = vpop.f32.mrf.mxu0 }
 0x7a0   :  { %1365 = vtanh.f32 %v966_v31  ;;  %v967_v33 = vmul.f32 0.5, %v957_v32 }
 0x7a1   :  { %v961_v34 = vpop.f32.mrf.mxu0 }
 0x7a2   :  { %1367 = vtanh.f32 %v967_v33  ;;  %v968_v35 = vmul.f32 0.5, %v961_v34 }
 0x7a3   :  { %v963_v36 = vpop.f32.mrf.mxu0 }
 0x7a4   :  { %1369 = vtanh.f32 %v968_v35  ;;  %v969_v37 = vmul.f32 0.5, %v963_v36 }
 0x7a6   :  { %1371 = vtanh.f32 %v969_v37 }
 0x7ad   :  { %v1366_v38 = vpop.eup %1365 }
 0x7ae   :  { %v974_v40 = vadd.f32 1.0, %v1366_v38 }
 0x7af   :  { %v1368_v39 = vpop.eup %1367 }
 0x7b0   :  { %v975_v41 = vadd.f32 1.0, %v1368_v39  ;;  %v978_v45 = vmul.f32 0.5, %v974_v40 }
 0x7b1   :  { %v1370_v42 = vpop.eup %1369 }
 0x7b2   :  { %v979_v43 = vmul.f32 0.5, %v975_v41  ;;  %v976_v46 = vadd.f32 1.0, %v1370_v42 }
 0x7b3   :  { %v1372_v44 = vpop.eup %1371 }
 0x7b4   :  { %v977_v47 = vadd.f32 1.0, %v1372_v44  ;;  %1159 = vmatprep.mubr.msk.f32.mxu1 %vm1032_vm11, %v979_v43  ;;  %v980_v49 = vmul.f32 0.5, %v976_v46 }
 0x7b5   :  { %1110 = vmatmul.mubr.f32.vlgmr.msra.gmra.mxu1 %v978_v45 }
 0x7b6   :  { %v981_v48 = vmul.f32 0.5, %v977_v47 }
 0x7b8   :  { %1160 = vmatprep.mubr.msk.f32.mxu1 %vm1032_vm11, %v981_v48 }
 0x7b9   :  { %1116 = vmatmul.mubr.f32.gmra.mxu1 %v980_v49 }
 0x7ba   :  { %1384 = shalt.err (!%p1381_p4)
}
 0x7bb   :  { %s1399_s25 = smov 16   ;;  %s1400_s26 = smov 1  }
 0x7bc   :  { %1139 = dma.vmem_to_hbm [thread:$0]  %s1134_s23, 32, %s1909_s8, [#allocation3], %s1399_s25, %s1399_s25, %s1400_s26  }
 0x875   :  { %v1111_v50 = vpop.f32.mrf.mxu1 }
 0x876   :  { %1122 = vst [vmem:[%s1908_s7] sm:$0xff] %v1111_v50 }
 0x877   :  { %v1113_v51 = vpop.f32.mrf.mxu1 }
 0x878   :  { %1123 = vst [vmem:[%s1908_s7 + $0x8] sm:$0xff] %v1113_v51 }
 0x879   :  { %v1117_v52 = vpop.f32.mrf.mxu1 }
 0x87a   :  { %1124 = vst [vmem:[%s1908_s7 + $0x10] sm:$0xff] %v1117_v52 }
 0x87b   :  { %v1119_v53 = vpop.f32.mrf.mxu1 }
 0x87c   :  { %1125 = vst [vmem:[%s1908_s7 + $0x18] sm:$0xff] %v1119_v53 }
 0x87d   :  { %1393 = dma.done.wait [#allocation3], 32  }
 0x87e   :  { %1394 = vsyncadd [#allocation3], 4294967264 }
 0x87f   :  { %1145 = vsyncpa [#allocation3], 1 }

</bundles_post_ra>
